<compile_context>
chip_gen: v5e
topology: v5e:2x2
jax: 0.10.0
libtpu: 0.0.40
codegen_flags: <defaults>
</compile_context>

<pallas_src>
import functools

import jax
import jax.numpy as jnp
from jax.experimental import pallas as pl
from jax.experimental.pallas import tpu as pltpu


def se_kernel(x_ref, w1t_ref, w2t_ref, o_ref, *, inv_hw):
    # x_ref  : (Nb, C, HWp)  activation tile (lane-dense, zero-padded past HW)
    # w1t_ref: (C, Cr)       fc1 weight, pre-transposed (row-vector matmul form)
    # w2t_ref: (Cr, C)       fc2 weight, pre-transposed
    x = x_ref[...]                                            # (Nb, C, HWp)

    # AdaptiveAvgPool2d(1): accumulate in f32; pad lanes are zero, so dividing
    # by the *true* HW gives the exact mean.
    s = jnp.sum(x.astype(jnp.float32), axis=-1) * inv_hw      # (Nb, C)

    # fc1 (1x1 conv, bias=False) + ReLU, then fc2 + sigmoid, all in f32.
    h = jnp.dot(s, w1t_ref[...].astype(jnp.float32),
                preferred_element_type=jnp.float32)           # (Nb, Cr)
    h = jnp.maximum(h, 0.0)
    g = jnp.dot(h, w2t_ref[...].astype(jnp.float32),
                preferred_element_type=jnp.float32)           # (Nb, C)
    g = jax.nn.sigmoid(g)

    # Cast gate to activation dtype so the dominant elementwise scale does not
    # promote the whole (C, HWp) slab to f32 when x is bf16.
    g = g.astype(x.dtype)
    o_ref[...] = (x * g[:, :, None]).astype(o_ref.dtype)


def se_module(x_nchw, w1, w2, *, target_tile_bytes=1 << 20):
    """SEModule forward.

    x_nchw: (N, C, H, W)
    w1    : (C//r, C)  == fc1.weight[:, :, 0, 0]
    w2    : (C, C//r)  == fc2.weight[:, :, 0, 0]
    """
    N, C, H, W = x_nchw.shape
    Cr = w1.shape[0]
    HW = H * W
    itemsize = jnp.dtype(x_nchw.dtype).itemsize

    # Lane-dense layout: pad spatial (lane) dim to a multiple of 128 with zeros.
    HWp = ((HW + 127) // 128) * 128
    x = x_nchw.reshape(N, C, HW)
    if HWp != HW:
        x = jnp.pad(x, ((0, 0), (0, 0), (0, HWp - HW)))

    # Pre-transpose 1x1-conv weights so the in-kernel FCs are lane-major.
    w1t = jnp.asarray(w1).T      # (C, Cr)
    w2t = jnp.asarray(w2).T      # (Cr, C)

    # Batch-block size: amortize the ~0.35 us per-grid-step overhead with
    # ~0.5-2 MB tiles, but keep >= 2 grid steps when N >= 2 (v7x megacore).
    per_img = C * HWp * itemsize
    nb = max(1, min(N, target_tile_bytes // max(per_img, 1)))
    if N >= 2:
        nb = max(1, min(nb, N // 2))
    while N % nb != 0:            # exact grid, no ragged trailing block
        nb -= 1
    grid = (N // nb,)

    tile_bytes = nb * per_img
    w_bytes = (w1t.size * jnp.dtype(w1t.dtype).itemsize
               + w2t.size * jnp.dtype(w2t.dtype).itemsize)
    # 2x double-buffered input tile + 2x output tile + weights + headroom;
    # clamped so the chosen tiles fit comfortably even on v7x's 64 MiB VMEM.
    vmem_limit = min(100 << 20, max(4 << 20, 4 * tile_bytes + w_bytes + (2 << 20)))

    # Mem-bound custom call: x read once + written once, tiny FC flops.
    cost = pl.CostEstimate(
        flops=int(2 * N * (C * Cr * 2) + 2 * N * C * HW),
        transcendentals=int(N * C),
        bytes_accessed=int(2 * N * C * HW * itemsize + w_bytes),
    )

    kernel = functools.partial(se_kernel, inv_hw=float(1.0 / HW))

    out = pl.pallas_call(
        kernel,
        out_shape=jax.ShapeDtypeStruct((N, C, HWp), x.dtype),
        grid_spec=pltpu.PrefetchScalarGridSpec(
            num_scalar_prefetch=0,
            grid=grid,
            in_specs=[
                pl.BlockSpec((nb, C, HWp), lambda n: (n, 0, 0)),
                pl.BlockSpec((C, Cr), lambda n: (0, 0)),
                pl.BlockSpec((Cr, C), lambda n: (0, 0)),
            ],
            out_specs=pl.BlockSpec((nb, C, HWp), lambda n: (n, 0, 0)),
        ),
        compiler_params=pltpu.CompilerParams(
            dimension_semantics=("parallel",),
            vmem_limit_bytes=int(vmem_limit),
        ),
        cost_estimate=cost,
    )(x, w1t, w2t)

    if HWp != HW:
        out = out[:, :, :HW]
    return out.reshape(N, C, H, W)


def se_reference(x, w1, w2):
    # Pure-JAX reference of the PyTorch forward for verification.
    s = jnp.mean(x, axis=(2, 3))                       # (N, C)
    h = jnp.maximum(s @ w1.T, 0.0)                     # (N, Cr)
    g = jax.nn.sigmoid(h @ w2.T)                       # (N, C)
    return x * g[:, :, None, None]


if __name__ == "__main__":
    # SEModule(channels=8, reduction=4)
    N, C, H, W = 2, 8, 16, 16
    reduction = 4
    Cr = C // reduction

    key = jax.random.PRNGKey(0)
    kx, k1, k2 = jax.random.split(key, 3)
    x = jax.random.normal(kx, (N, C, H, W), dtype=jnp.float32)
    # Conv2d 1x1, bias=False -> pure matrices.
    w1 = jax.random.normal(k1, (Cr, C), dtype=jnp.float32) * 0.1   # fc1.weight[:, :, 0, 0]
    w2 = jax.random.normal(k2, (C, Cr), dtype=jnp.float32) * 0.1   # fc2.weight[:, :, 0, 0]

    out = se_module(x, w1, w2)
    jax.block_until_ready(out)

    ref = se_reference(x, w1, w2)
    assert out.shape == (N, C, H, W)
    assert jnp.allclose(out, ref, atol=1e-5, rtol=1e-5), "mismatch vs reference"

    # Also exercise a non-multiple-of-128 spatial size (padding path, bf16 input).
    x2 = jax.random.normal(kx, (4, C, 7, 7), dtype=jnp.bfloat16)
    out2 = se_module(x2, w1, w2)
    jax.block_until_ready(out2)
    ref2 = se_reference(x2.astype(jnp.float32), w1, w2)
    assert jnp.allclose(out2.astype(jnp.float32), ref2, atol=2e-2, rtol=2e-2)

    print("KERNEL_OK")
</pallas_src>

<mosaic_0001>
module attributes {stable_mosaic.version = 11 : i64} {
  func.func @se_kernel(%arg0: i32, %arg1: memref<1x8x256xf32, #tpu.memory_space<vmem>>, %arg2: memref<8x2xf32, #tpu.memory_space<vmem>>, %arg3: memref<2x8xf32, #tpu.memory_space<vmem>>, %arg4: memref<1x8x256xf32, #tpu.memory_space<vmem>>) attributes {dimension_semantics = [#tpu.dimension_semantics<parallel>], iteration_bounds = array<i64: 2>, scalar_prefetch = 0 : i64, scratch_operands = 0 : i64, tpu.core_type = #tpu.core_type<tc>, window_params = [{transform_indices = @transform_0, window_bounds = array<i64: 1, 8, 256>}, {pipeline_mode = #tpu.pipeline_mode<synchronous>, transform_indices = @transform_1, window_bounds = array<i64: 8, 2>}, {pipeline_mode = #tpu.pipeline_mode<synchronous>, transform_indices = @transform_2, window_bounds = array<i64: 2, 8>}, {transform_indices = @transform_3, window_bounds = array<i64: 1, 8, 256>}]} {
    %c0 = arith.constant 0 : index
    %c0_0 = arith.constant 0 : index
    %c0_1 = arith.constant 0 : index
    %0 = vector.load %arg1[%c0, %c0_0, %c0_1] : memref<1x8x256xf32, #tpu.memory_space<vmem>>, vector<1x8x256xf32>
    %cst = arith.constant dense<0.000000e+00> : vector<1x8xf32>
    %1 = vector.multi_reduction <add>, %0, %cst [2] : vector<1x8x256xf32> to vector<1x8xf32>
    %cst_2 = arith.constant 3.906250e-03 : f32
    %2 = vector.broadcast %cst_2 : f32 to vector<1x8xf32>
    %3 = arith.mulf %1, %2 : vector<1x8xf32>
    %c0_3 = arith.constant 0 : index
    %c0_4 = arith.constant 0 : index
    %4 = vector.load %arg2[%c0_3, %c0_4] : memref<8x2xf32, #tpu.memory_space<vmem>>, vector<8x2xf32>
    %cst_5 = arith.constant dense<0.000000e+00> : vector<1x2xf32>
    %5 = tpu.matmul %3, %4, %cst_5 {dimension_numbers = #tpu.dot_dimension_numbers<[1], [0], [0], [1], [0, 0, 1, 1], [], []>} : vector<1x8xf32>, vector<8x2xf32>, vector<1x2xf32> -> vector<1x2xf32>
    %cst_6 = arith.constant 0.000000e+00 : f32
    %6 = vector.broadcast %cst_6 : f32 to vector<1x2xf32>
    %7 = arith.maximumf %5, %6 : vector<1x2xf32>
    %c0_7 = arith.constant 0 : index
    %c0_8 = arith.constant 0 : index
    %8 = vector.load %arg3[%c0_7, %c0_8] : memref<2x8xf32, #tpu.memory_space<vmem>>, vector<2x8xf32>
    %cst_9 = arith.constant dense<0.000000e+00> : vector<1x8xf32>
    %9 = tpu.matmul %7, %8, %cst_9 {dimension_numbers = #tpu.dot_dimension_numbers<[1], [0], [0], [1], [0, 0, 1, 1], [], []>} : vector<1x2xf32>, vector<2x8xf32>, vector<1x8xf32> -> vector<1x8xf32>
    %10 = arith.negf %9 : vector<1x8xf32>
    %11 = math.exp %10 : vector<1x8xf32>
    %cst_10 = arith.constant 1.000000e+00 : f32
    %12 = vector.broadcast %cst_10 : f32 to vector<1x8xf32>
    %13 = arith.addf %12, %11 : vector<1x8xf32>
    %14 = arith.divf %12, %13 : vector<1x8xf32>
    %15 = vector.shape_cast %14 : vector<1x8xf32> to vector<1x8x1xf32>
    %16 = vector.broadcast %15 : vector<1x8x1xf32> to vector<1x8x256xf32>
    %17 = arith.mulf %0, %16 : vector<1x8x256xf32>
    %c0_11 = arith.constant 0 : index
    %c0_12 = arith.constant 0 : index
    %c0_13 = arith.constant 0 : index
    %18 = vector.load %arg4[%c0_11, %c0_12, %c0_13] : memref<1x8x256xf32, #tpu.memory_space<vmem>>, vector<1x8x256xf32>
    tpu.vector_store %arg4[%c0_11, %c0_12, %c0_13], %17 {strides = array<i32>} : memref<1x8x256xf32, #tpu.memory_space<vmem>>, vector<1x8x256xf32>,
    return
  }
  func.func @transform_0(%arg0: i32) -> (i32, i32, i32) {
    %c0_i32 = arith.constant 0 : i32
    %c0_i32_0 = arith.constant 0 : i32
    %c0_i32_1 = arith.constant 0 : i32
    return %arg0, %c0_i32, %c0_i32_0 : i32, i32, i32
  }
  func.func @transform_1(%arg0: i32) -> (i32, i32) {
    %c0_i32 = arith.constant 0 : i32
    %c0_i32_0 = arith.constant 0 : i32
    %c0_i32_1 = arith.constant 0 : i32
    return %c0_i32, %c0_i32_0 : i32, i32
  }
  func.func @transform_2(%arg0: i32) -> (i32, i32) {
    %c0_i32 = arith.constant 0 : i32
    %c0_i32_0 = arith.constant 0 : i32
    %c0_i32_1 = arith.constant 0 : i32
    return %c0_i32, %c0_i32_0 : i32, i32
  }
  func.func @transform_3(%arg0: i32) -> (i32, i32, i32) {
    %c0_i32 = arith.constant 0 : i32
    %c0_i32_0 = arith.constant 0 : i32
    %c0_i32_1 = arith.constant 0 : i32
    return %arg0, %c0_i32, %c0_i32_0 : i32, i32, i32
  }
}

</mosaic_0001>

<bundles_post_ra>
// kernel: tpu_custom_call.1
= control target key start
LH: loop header
LB: loop body
LE: loop exit
PB: predicated region body
PF: predicated region fallthrough
CT: control target
= control target key end

     0   :  { %8 = vsyncpa [#allocation3], 0  ;;  %s696_s0 = inlined_call_operand.hbm [shape: f32[2,8,256], index: 0, kind: input, shape index: {}]   ;;  %s697_s1 = inlined_call_operand.vmem [shape: f32[8,2], index: 1, kind: input, shape index: {}]   ;;  %s698_s2 = inlined_call_operand.vmem [shape: f32[2,8], index: 2, kind: input, shape index: {}]   ;;  %s699_s3 = inlined_call_operand.hbm [shape: f32[2,8,256], index: 3, kind: output, shape index: {}]  }
   0x1   :  { %10 = vsyncpa [#allocation3 + $0x1], 0 }
   0x2   :  { %11 = vsyncpa [#allocation4], 0 }
   0x3   :  { %13 = vsyncpa [#allocation4 + $0x1], 0  ;;  %s559_s12 = smov 0   ;;  %s561_s13 = smov 0  }
   0x4   :  { %s563_s14 = smov 0   ;;  %s565_s15 = smov 0  }
   0x5 LB: > { %s580_s16 = sadd.s32 4294967295, %s537_s15   ;;  %s370_s17 = sadd.s32 4294967294, %s537_s15   ;;  %s537_s15 = sphi %s565_s15, %s709_s15   ;;  %s533_s14 = sphi %s563_s14, %s708_s14   ;;  %s529_s13 = sphi %s561_s13, %s707_s13   ;;  %s525_s12 = sphi %s559_s12, %s706_s12  }
   0x6   : > { %s584_s18 = sadd.s32 1, %s537_s15   ;;  %s26_s19 = sadd.s32 1, %s533_s14 }
   0x7   : > { %s23_s20 = ssub.s32 %s537_s15, %s584_s18  ;;  %p33_p0 = scmp.ne.s32.totalorder %s533_s14, %s529_s13 }
   0x8   : > { %p24_p1 = scmp.eq.s32.totalorder %s23_s20, 0  ;;  %p34_p2 = scmp.eq.s32.totalorder %s537_s15, 0 }
   0x9   : > { %p39_p3 = scmp.ne.s32.totalorder %s529_s13, %s525_s12  ;;  %p40_p4 = scmp.eq.s32.totalorder %s580_s16, 0 }
   0xa   : > { %s596_s21 = scalar_select %p24_p1, %s533_s14, %s26_s19  }
   0xb   : > { %p598_p5 = por %p34_p2, %p33_p0  ;;  %p602_p6 = por %p40_p4, %p39_p3 }
   0xc   : > { %p105_p7 = scmp.eq.s32.totalorder %s580_s16, 1  ;;  %p111_p8 = scmp.eq.s32.totalorder %s370_s17, 1 }
   0xd   : > { %p402_p10 = scmp.lt.s32.totalorder %s537_s15, 2  ;;  %s137_s26 = sand.u32 1, %s533_s14  }
   0xe   : > { %p609_p11 = por %p105_p7, %p33_p0  ;;  %p613_p12 = por %p111_p8, %p39_p3 }
   0xf   : > { %s388_s27 = sshll.u32 %s537_s15, 4  ;;  %s373_s28 = sshll.u32 %s137_s26, 4 }
  0x10   : > { %s146_s4 = scalar_lea.hbm %s696_s0, %s388_s27  ;;  %s141_s6 = scalar_lea.vmem [#allocation2], %s373_s28 }
  0x11   : > { %s148_s5 = sshll.u32 %s146_s4, 4  ;;  %s150_s7 = sshll.u32 %s141_s6, 4  ;;  %s149_s5 = int_to_ptr.hbm [resolvable:$true] %s148_s5  ;;  %s151_s7 = int_to_ptr.vmem [resolvable:$true] %s150_s7 }
  0x12   : > { %p624_p13 = pnand %p402_p10, %p598_p5  ;;  %p376_p0 = scmp.ge.s32.totalorder %s537_s15, 1 }
  0x13   : > { %p155_p1 = scmp.lt.s32.totalorder %s537_s15, 3  ;;  %s138_s9 = scalar_lea.sflag [#allocation3], %s137_s26 }
  0x14   : > { %s441_s10 = sshra.s32 %s149_s5, 4  ;;  %p445_p3 = pneg %p624_p13  ;;  %s442_s10 = int_to_ptr.hbm [resolvable:$true] %s441_s10 }
  0x15   : > { %s443_s11 = scalar_lea.hbm %s442_s10, 16  ;;  %s448_s20 = scalar_lea.hbm %s696_s0, 32 }
  0x16   : > { %p444_p2 = scmp.ne.s32.totalorder %s442_s10, %s443_s11  ;;  %p449_p5 = scmp.lt.s32.totalorder %s442_s10, %s696_s0 }
  0x17   : > { %p450_p8 = scmp.lt.s32.totalorder %s448_s20, %s443_s11 }
  0x18   : > { %p446_p4 = pnand %p445_p3, %p444_p2 }
  0x19   : > { %p451_p10 = por %p450_p8, %p449_p5 }
  0x1a   : > { %p447_p7 = pneg %p446_p4 }
  0x1c   : > { %p452_p9 = pnand %p451_p10, %p447_p7 }
  0x1e   : > { %455 = shalt.err (!%p452_p9)
}
  0x1f   : > { %397 = dma.hbm_to_vmem [thread:$0]  (!%p624_p13), %s149_s5, 256, %s151_s7, %s138_s9  }
  0x20   : > { %p156_p2 = pnand %p376_p0, %p155_p1 }
  0x21   : > { %s645_s26 = sand.u32 (!%p156_p2), 1, %s529_s13  }
  0x22   : > { %159 = sbr.rel (%p156_p2) target bundleno = 568 (0x238), region = 32  ;;  %s377_s28 = sshll.u32 (!%p156_p2), %s645_s26, 4 }
  0x23   : > { %s162_s29 = scalar_lea.sflag (!%p156_p2), [#allocation3], %s645_s26  ;;  %s165_s30 = scalar_lea.vmem (!%p156_p2), [#allocation2], %s377_s28 }
  0x27   : > { %516 = dma.done.wait (%p602_p6), %s162_s29, 256  }
  0x28   : > { %518 = vsyncadd (%p602_p6), %s162_s29, 4294967040  ;;  %v189_v0 = vld [vmem:[%s165_s30] sm:$0xff]  ;;  %v190_v1 = vld [vmem:[%s165_s30 + $0x8] sm:$0xff]  ;;  %v197_v4 = vlaneseq  ;;  %vm200_vm0 = vcmask 64512   ;;  %vm229_vm1 = vcmask 1041408   ;;  %vm225_vm2 = vcmask 15360  }
  0x29   : > { %v191_v2 = vadd.f32 %v190_v1, %v189_v0  ;;  %v195_v3 = vld [vmem:[%s697_s1] sm:$0xff]  ;;  %s389_s23 = sshll.u32 %s580_s16, 4  ;;  %s188_s11 = scalar_lea.vmem [#allocation5], %s377_s28 }
  0x2a   : > { %218 = vmatpush.msra.mxu0 %v195_v3  ;;  %v198_v5 = vand.u32 127, %v197_v4  ;;  %v224_v9 = vld [vmem:[%s698_s2] sm:$0x3]  ;;  %v274_v12 = vshrl.u32 %v197_v4, 7  ;;  %s295_s10 = scalar_lea.hbm %s699_s3, %s389_s23  ;;  %s297_s17 = sshll.u32 %s188_s11, 4  ;;  %s298_s17 = int_to_ptr.vmem [resolvable:$true] %s297_s17 }
  0x2b   : > { %192 = vadd.xlane.f32.xlu0 %v191_v2  ;;  %380 = vmatpush.msk.msra.mxu1 %vm229_vm1, %v224_v9  ;;  %s299_s19 = sshll.u32 %s295_s10, 4  ;;  %s284_s20 = scalar_lea.sflag [#allocation4], %s645_s26  ;;  %s300_s19 = int_to_ptr.hbm [resolvable:$true] %s299_s19 }
  0x2c   : > { %436 = vset.pattern.permute.xlu0 %v274_v12  ;;  %s485_s22 = sshra.s32 %s300_s19, 4  ;;  %s491_s28 = scalar_lea.hbm %s699_s3, 32  ;;  %s486_s22 = int_to_ptr.hbm [resolvable:$true] %s485_s22 }
  0x2d   : > { %s487_s16 = scalar_lea.hbm %s486_s22, 16  ;;  %p492_p0 = scmp.lt.s32.totalorder %s486_s22, %s699_s3 }
  0x2e   : > { %p488_p6 = scmp.ne.s32.totalorder %s486_s22, %s487_s16  ;;  %p493_p1 = scmp.lt.s32.totalorder %s491_s28, %s487_s16 }
  0x30   : > { %p489_p9 = pnand %p488_p6, %p609_p11  ;;  %p494_p3 = por %p493_p1, %p492_p0 }
  0x32   : > { %p490_p13 = pneg %p489_p9 }
  0x34   : > { %p495_p4 = pnand %p494_p3, %p490_p13 }
  0x9e   : > { %v193_v6 = vpop.xlane.xlu0 %192 }
  0x9f   : > { %v194_v7 = vmul.f32 0.00390625, %v193_v6 }
  0xa1   : > { %v199_v8 = vperm.slane %v194_v7, %v198_v5 }
  0xa3   : > { %379 = vmatmul.msk.f32.vlgmr.msra.gmra.mxu0 %vm200_vm0, %v199_v8 }
 0x120   : > { %v220_v10 = vpop.f32.mrf.mxu0 }
 0x121   : > { %v223_v11 = vmax.f32 %v220_v10, 0.0 }
 0x123   : > { %381 = vmatmul.msk.f32.vlgmr.msra.gmra.mxu1 %vm225_vm2, %v223_v11 }
 0x1a0   : > { %v250_v13 = vpop.f32.mrf.mxu1 }
 0x1a1   : > { %v382_v14 = vmul.f32 -1.442695, %v250_v13 }
 0x1a3   : > { %437 = vpow2.f32 %v382_v14 }
 0x1a9   : > { %v438_v15 = vpop.eup %437 }
 0x1aa   : > { %v256_v16 = vadd.f32 1.0, %v438_v15 }
 0x1ac   : > { %439 = vrcp.f32 %v256_v16  ;;  %v268_v20 = vand.u32 2147483648, %v256_v16  ;;  %v266_v22 = vand.u32 2147483647, %v256_v16  ;;  %vm262_vm4 = vweird.f32 %v256_v16 }
 0x1ae   : > { %v269_v24 = vor.u32 1.1754944e-38, %v268_v20  ;;  %vm267_vm6 = vcmp.eq.f32.partialorder %v266_v22, 8.507059e+37 }
 0x1b2   : > { %v440_v17 = vpop.eup %439 }
 0x1b3   : > { %v258_v18 = vmul.f32 %v440_v17, %v256_v16  ;;  %vm263_vm3 = vweird.f32 %v440_v17 }
 0x1b4   : > { %vm264_vm5 = vmor %vm262_vm4, %vm263_vm3 }
 0x1b5   : > { %v259_v19 = vsub.f32 1.0, %v258_v18 }
 0x1b7   : > { %v260_v21 = vmul.f32 %v440_v17, %v259_v19 }
 0x1b9   : > { %v261_v23 = vadd.f32 %v440_v17, %v260_v21 }
 0x1bb   : > { %v265_v25 = vsel %vm264_vm5, %v440_v17, %v261_v23 }
 0x1bc   : > { %v270_v26 = vsel %vm267_vm6, %v269_v24, %v265_v25 }
 0x1bd   : > { %v272_v27 = vperm.slane %v270_v26, 0 }
 0x1bf   : > { %277 = vperm.xlu0 %436, %v272_v27  }
 0x231   : > { %v278_v28 = vpop.permute.xlu0 %277 }
 0x232   : > { %v279_v29 = vmul.f32 %v278_v28, %v189_v0  ;;  %v280_v30 = vmul.f32 %v278_v28, %v190_v1 }
 0x234   : > { %281 = vst [vmem:[%s188_s11] sm:$0xff] %v279_v29 }
 0x235   : > { %282 = vst [vmem:[%s188_s11 + $0x8] sm:$0xff] %v280_v30 }
 0x236   : > { %498 = shalt.err (!%p495_p4)
}
 0x237   : > { %392 = dma.vmem_to_hbm [thread:$0]  (%p609_p11), %s298_s17, 256, %s300_s19, %s284_s20  }
 0x238 PF: > { %s311_s26 = sand.u32 1, %s525_s12   ;;  %p705_p7 = scmp.ge.s32.totalorder %s537_s15, 2 }
 0x239   : > { %s312_s5 = scalar_lea.sflag [#allocation4], %s311_s26 }
 0x23a   : > { %p399_p5 = pnand %p705_p7, %p613_p12 }
 0x23c   : > { %p400_p8 = pneg %p399_p5 }
 0x23e   : > { %520 = dma.done.wait (%p400_p8), %s312_s5, 256  }
 0x23f   : > { %522 = vsyncadd (%p400_p8), %s312_s5, 4294967040  ;;  %p16_p10 = scmp.ge.s32.totalorder %s584_s18, 4   ;;  %s706_s12 = smov %s529_s13 }
 0x240   : > { %s707_s13 = smov %s533_s14  ;;  %s708_s14 = smov %s596_s21 }
 0x241   : > { %s709_s15 = smov %s584_s18  ;;  %18 = sbr.rel (!%p16_p10) target bundleno = 5 (0x5), region = 77 }
 0x246   :  { %318 = vsyncpa [#allocation3], 1 }
 0x247   :  { %320 = vsyncpa [#allocation3 + $0x1], 1 }
 0x248   :  { %321 = vsyncpa [#allocation4], 1 }
 0x249   :  { %323 = vsyncpa [#allocation4 + $0x1], 1 }

</bundles_post_ra>
